<compile_context>
chip_gen: v7x
topology: tpu7x:2x2x1
jax: 0.10.0
libtpu: 0.0.40
codegen_flags: <defaults>
</compile_context>

<pallas_src>
import functools

import jax
import jax.numpy as jnp
from jax.experimental import pallas as pl
from jax.experimental.pallas import tpu as pltpu

LANE = 128  # vreg lane width
SUBLANE = 8  # vreg sublane count


def _round_up(x: int, m: int) -> int:
    return (x + m - 1) // m * m


def _mlp_kernel(x_ref, w1_ref, b1_ref, w2_ref, b2_ref, o_ref):
    # First layer: bf16 MXU matmul, f32 accumulate; bias add + tanh in f32
    # (f32 VPU/EUP works on every TPU generation; bf16 is only used as MXU input).
    h = jnp.tanh(
        jnp.dot(x_ref[...], w1_ref[...], preferred_element_type=jnp.float32)
        + b1_ref[...]
    )
    # Second layer: cast the activation to bf16 only for the MXU.
    o_ref[...] = jnp.tanh(
        jnp.dot(h.astype(jnp.bfloat16), w2_ref[...],
                preferred_element_type=jnp.float32)
        + b2_ref[...]
    ).astype(o_ref.dtype)


@functools.partial(jax.jit, static_argnames=("block_b",))
def basic_linear_net(x, w1, b1, w2, b2, *, block_b: int = 128):
    """Fused 2-layer tanh MLP.

    x  : (B, in_features)        f32
    w1 : (in_features, hidden)   f32  (already x @ w layout, == torch W1.T)
    b1 : (1, hidden)             f32
    w2 : (hidden, out_features)  f32
    b2 : (1, out_features)       f32
    """
    B, in_f = x.shape
    hidden = w1.shape[1]
    out_f = w2.shape[1]

    # Lane-dense padded sizes (zero padding is exact, see header comment).
    in_p = _round_up(in_f, LANE)
    hid_p = _round_up(hidden, LANE)
    out_p = _round_up(out_f, LANE)

    # Batch tile: multiple of 8 sublanes, capped at block_b.
    tb = min(_round_up(B, SUBLANE), _round_up(block_b, SUBLANE))
    b_p = _round_up(B, tb)

    # Zero-padded, bf16 matmul operands / f32 biases.
    x_p = jnp.zeros((b_p, in_p), jnp.bfloat16).at[:B, :in_f].set(
        x.astype(jnp.bfloat16))
    w1_p = jnp.zeros((in_p, hid_p), jnp.bfloat16).at[:in_f, :hidden].set(
        w1.astype(jnp.bfloat16))
    b1_p = jnp.zeros((1, hid_p), jnp.float32).at[:, :hidden].set(b1)
    w2_p = jnp.zeros((hid_p, out_p), jnp.bfloat16).at[:hidden, :out_f].set(
        w2.astype(jnp.bfloat16))
    b2_p = jnp.zeros((1, out_p), jnp.float32).at[:, :out_f].set(b2)

    grid = (b_p // tb,)

    out_padded = pl.pallas_call(
        _mlp_kernel,
        out_shape=jax.ShapeDtypeStruct((b_p, out_p), jnp.float32),
        grid=grid,
        in_specs=[
            pl.BlockSpec((tb, in_p), lambda i: (i, 0)),     # x: tiled over batch
            pl.BlockSpec((in_p, hid_p), lambda i: (0, 0)),  # w1: resident
            pl.BlockSpec((1, hid_p), lambda i: (0, 0)),     # b1: resident
            pl.BlockSpec((hid_p, out_p), lambda i: (0, 0)), # w2: resident
            pl.BlockSpec((1, out_p), lambda i: (0, 0)),     # b2: resident
        ],
        out_specs=pl.BlockSpec((tb, out_p), lambda i: (i, 0)),
        compiler_params=pltpu.CompilerParams(
            dimension_semantics=("parallel",),  # 2x on v7x dual TC, neutral elsewhere
        ),
    )(x_p, w1_p, b1_p, w2_p, b2_p)

    # Strip batch + lane padding.
    return out_padded[:B, :out_f]


def init_params(key, in_features, hidden_nodes, out_features):
    """Deterministic init mimicking torch nn.Linear (uniform +/- 1/sqrt(fan_in))."""
    k1, k2, k3, k4 = jax.random.split(key, 4)
    bound1 = 1.0 / (in_features ** 0.5)
    bound2 = 1.0 / (hidden_nodes ** 0.5)
    # Stored as (in, out) so the kernel does x @ w directly (== x @ W.T in torch).
    w1 = jax.random.uniform(k1, (in_features, hidden_nodes), jnp.float32,
                            -bound1, bound1)
    b1 = jax.random.uniform(k2, (1, hidden_nodes), jnp.float32, -bound1, bound1)
    w2 = jax.random.uniform(k3, (hidden_nodes, out_features), jnp.float32,
                            -bound2, bound2)
    b2 = jax.random.uniform(k4, (1, out_features), jnp.float32, -bound2, bound2)
    return w1, b1, w2, b2


if __name__ == "__main__":
    key = jax.random.PRNGKey(0)
    k_x, k_p = jax.random.split(key)

    # Small shapes consistent with BasicLinearNet tests; batch chosen so the
    # kernel exercises a real (2-step) batch grid with block_b=32.
    batch = 64
    in_features = 16
    hidden_nodes = 32
    out_features = 8

    x = jax.random.normal(k_x, (batch, in_features), jnp.float32)
    w1, b1, w2, b2 = init_params(k_p, in_features, hidden_nodes, out_features)

    out = basic_linear_net(x, w1, b1, w2, b2, block_b=32)
    out = jax.block_until_ready(out)
    assert out.shape == (batch, out_features)

    # Reference 1: same bf16-operand / f32-accumulate recipe in plain JAX
    # (validates the Pallas mechanics tightly).
    h_ref = jnp.tanh(
        jnp.dot(x.astype(jnp.bfloat16), w1.astype(jnp.bfloat16),
                preferred_element_type=jnp.float32) + b1)
    ref_bf16 = jnp.tanh(
        jnp.dot(h_ref.astype(jnp.bfloat16), w2.astype(jnp.bfloat16),
                preferred_element_type=jnp.float32) + b2)
    assert jnp.allclose(out, ref_bf16, atol=2e-3, rtol=2e-3), \
        "mismatch vs bf16-matched reference"

    # Reference 2: full-f32 torch-equivalent forward (validates that bf16
    # quantization error stays small).
    ref_f32 = jnp.tanh(jnp.tanh(x @ w1 + b1) @ w2 + b2)
    assert jnp.allclose(out, ref_f32, atol=5e-2, rtol=5e-2), \
        "mismatch vs f32 reference"

    print("KERNEL_OK")
</pallas_src>

<mosaic_0001>
module attributes {stable_mosaic.version = 11 : i64} {
  func.func @_mlp_kernel(%arg0: i32, %arg1: memref<32x128xbf16, #tpu.memory_space<vmem>>, %arg2: memref<128x128xbf16, #tpu.memory_space<vmem>>, %arg3: memref<1x128xf32, #tpu.memory_space<vmem>>, %arg4: memref<128x128xbf16, #tpu.memory_space<vmem>>, %arg5: memref<1x128xf32, #tpu.memory_space<vmem>>, %arg6: memref<32x128xf32, #tpu.memory_space<vmem>>) attributes {dimension_semantics = [#tpu.dimension_semantics<parallel>], iteration_bounds = array<i64: 2>, scalar_prefetch = 0 : i64, scratch_operands = 0 : i64, tpu.core_type = #tpu.core_type<tc>, window_params = [{transform_indices = @transform_0, window_bounds = array<i64: 32, 128>}, {pipeline_mode = #tpu.pipeline_mode<synchronous>, transform_indices = @transform_1, window_bounds = array<i64: 128, 128>}, {pipeline_mode = #tpu.pipeline_mode<synchronous>, transform_indices = @transform_2, window_bounds = array<i64: 1, 128>}, {pipeline_mode = #tpu.pipeline_mode<synchronous>, transform_indices = @transform_3, window_bounds = array<i64: 128, 128>}, {pipeline_mode = #tpu.pipeline_mode<synchronous>, transform_indices = @transform_4, window_bounds = array<i64: 1, 128>}, {transform_indices = @transform_5, window_bounds = array<i64: 32, 128>}]} {
    %c0 = arith.constant 0 : index
    %c0_0 = arith.constant 0 : index
    %0 = vector.load %arg1[%c0, %c0_0] : memref<32x128xbf16, #tpu.memory_space<vmem>>, vector<32x128xbf16>
    %c0_1 = arith.constant 0 : index
    %c0_2 = arith.constant 0 : index
    %1 = vector.load %arg2[%c0_1, %c0_2] : memref<128x128xbf16, #tpu.memory_space<vmem>>, vector<128x128xbf16>
    %cst = arith.constant dense<0.000000e+00> : vector<32x128xf32>
    %2 = tpu.matmul %0, %1, %cst {dimension_numbers = #tpu.dot_dimension_numbers<[1], [0], [0], [1], [0, 0, 1, 1], [], []>} : vector<32x128xbf16>, vector<128x128xbf16>, vector<32x128xf32> -> vector<32x128xf32>
    %c0_3 = arith.constant 0 : index
    %c0_4 = arith.constant 0 : index
    %3 = vector.load %arg3[%c0_3, %c0_4] : memref<1x128xf32, #tpu.memory_space<vmem>>, vector<1x128xf32>
    %4 = vector.broadcast %3 : vector<1x128xf32> to vector<32x128xf32>
    %5 = arith.addf %2, %4 : vector<32x128xf32>
    %6 = math.tanh %5 : vector<32x128xf32>
    %7 = arith.truncf %6 : vector<32x128xf32> to vector<32x128xbf16>
    %c0_5 = arith.constant 0 : index
    %c0_6 = arith.constant 0 : index
    %8 = vector.load %arg4[%c0_5, %c0_6] : memref<128x128xbf16, #tpu.memory_space<vmem>>, vector<128x128xbf16>
    %cst_7 = arith.constant dense<0.000000e+00> : vector<32x128xf32>
    %9 = tpu.matmul %7, %8, %cst_7 {dimension_numbers = #tpu.dot_dimension_numbers<[1], [0], [0], [1], [0, 0, 1, 1], [], []>} : vector<32x128xbf16>, vector<128x128xbf16>, vector<32x128xf32> -> vector<32x128xf32>
    %c0_8 = arith.constant 0 : index
    %c0_9 = arith.constant 0 : index
    %10 = vector.load %arg5[%c0_8, %c0_9] : memref<1x128xf32, #tpu.memory_space<vmem>>, vector<1x128xf32>
    %11 = vector.broadcast %10 : vector<1x128xf32> to vector<32x128xf32>
    %12 = arith.addf %9, %11 : vector<32x128xf32>
    %13 = math.tanh %12 : vector<32x128xf32>
    %c0_10 = arith.constant 0 : index
    %c0_11 = arith.constant 0 : index
    %14 = vector.load %arg6[%c0_10, %c0_11] : memref<32x128xf32, #tpu.memory_space<vmem>>, vector<32x128xf32>
    tpu.vector_store %arg6[%c0_10, %c0_11], %13 {strides = array<i32>} : memref<32x128xf32, #tpu.memory_space<vmem>>, vector<32x128xf32>,
    return
  }
  func.func @transform_0(%arg0: i32) -> (i32, i32) {
    %c0_i32 = arith.constant 0 : i32
    %c0_i32_0 = arith.constant 0 : i32
    return %arg0, %c0_i32 : i32, i32
  }
  func.func @transform_1(%arg0: i32) -> (i32, i32) {
    %c0_i32 = arith.constant 0 : i32
    %c0_i32_0 = arith.constant 0 : i32
    %c0_i32_1 = arith.constant 0 : i32
    return %c0_i32, %c0_i32_0 : i32, i32
  }
  func.func @transform_2(%arg0: i32) -> (i32, i32) {
    %c0_i32 = arith.constant 0 : i32
    %c0_i32_0 = arith.constant 0 : i32
    %c0_i32_1 = arith.constant 0 : i32
    return %c0_i32, %c0_i32_0 : i32, i32
  }
  func.func @transform_3(%arg0: i32) -> (i32, i32) {
    %c0_i32 = arith.constant 0 : i32
    %c0_i32_0 = arith.constant 0 : i32
    %c0_i32_1 = arith.constant 0 : i32
    return %c0_i32, %c0_i32_0 : i32, i32
  }
  func.func @transform_4(%arg0: i32) -> (i32, i32) {
    %c0_i32 = arith.constant 0 : i32
    %c0_i32_0 = arith.constant 0 : i32
    %c0_i32_1 = arith.constant 0 : i32
    return %c0_i32, %c0_i32_0 : i32, i32
  }
  func.func @transform_5(%arg0: i32) -> (i32, i32) {
    %c0_i32 = arith.constant 0 : i32
    %c0_i32_0 = arith.constant 0 : i32
    return %arg0, %c0_i32 : i32, i32
  }
}

</mosaic_0001>

<bundles_post_ra>
// kernel: basic_linear_net.1
= control target key start
LH: loop header
LB: loop body
LE: loop exit
PB: predicated region body
PF: predicated region fallthrough
CT: control target
= control target key end

     0   :  { %s726_s18 = smov 0   ;;  %s801_s0 = inlined_call_operand.vmem [shape: bf16[64,128], index: 0, kind: input, shape index: {}]   ;;  %s802_s1 = inlined_call_operand.vmem [shape: bf16[128,128], index: 1, kind: input, shape index: {}]   ;;  %s803_s2 = inlined_call_operand.vmem [shape: f32[1,128], index: 2, kind: input, shape index: {}]   ;;  %s804_s3 = inlined_call_operand.vmem [shape: bf16[128,128], index: 3, kind: input, shape index: {}]   ;;  %s805_s4 = inlined_call_operand.vmem [shape: f32[1,128], index: 4, kind: input, shape index: {}]   ;;  %s806_s5 = inlined_call_operand.vmem [shape: f32[64,128], index: 5, kind: output, shape index: {}]  }
   0x1 LB: > { %s555_s19 = sadd.s32 4294967295, %s694_s18   ;;  %p559_p0 = scmp.ge.s32.totalorder %s694_s18, 1  ;;  %s694_s18 = sphi %s726_s18, %s15_s18  }
   0x2   : > { %p188_p1 = scmp.lt.s32.totalorder %s694_s18, 3 }
   0x4   : > { %p189_p2 = pnand %p559_p0, %p188_p1 }
   0x5   : > { %v654_v0 = vld [vmem:[%s802_s1] sm:$0xff] (!%p189_p2)   ;;  %s560_s22 = sshll.u32 (!%p189_p2), %s555_s19, 2  ;;  %v655_v1 = vld [vmem:[%s802_s1 + $0x8] sm:$0xff] (!%p189_p2)   ;;  %v656_v2 = vld [vmem:[%s802_s1 + $0x10] sm:$0xff] (!%p189_p2)  }
   0x6   : > { %192 = sbr.rel (%p189_p2) target bundleno = 500 (0x1f4), region = 40  ;;  %p217_p3 = scmp.lt.s32.totalorder (!%p189_p2), %s560_s22, 7  ;;  %606 = vmatprep.subr.bf16.mxu0 (!%p189_p2), %v654_v0  ;;  %v657_v3 = vld [vmem:[%s802_s1 + $0x18] sm:$0xff] (!%p189_p2)   ;;  %v658_v5 = vld [vmem:[%s802_s1 + $0x20] sm:$0xff] (!%p189_p2)   ;;  %v665_v7 = vld [vmem:[%s804_s3 + $0x8] sm:$0xff] (!%p189_p2)  }
   0x7   : > { %607 = vmatpush3.bf16.msra.mxu0 (!%p189_p2), %v654_v0  ;;  %v664_v6 = vld [vmem:[%s804_s3] sm:$0xff] (!%p189_p2)   ;;  %v666_v8 = vld [vmem:[%s804_s3 + $0x10] sm:$0xff] (!%p189_p2)   ;;  %v659_v9 = vld [vmem:[%s802_s1 + $0x28] sm:$0xff] (!%p189_p2)  }
   0x8   : > { %608 = vmatprep.subr.bf16.mxu0 (!%p189_p2), %v655_v1  ;;  %626 = vmatprep.subr.bf16.mxu1 (!%p189_p2), %v664_v6  ;;  %v660_v10 = vld [vmem:[%s802_s1 + $0x30] sm:$0xff] (!%p189_p2)   ;;  %v661_v11 = vld [vmem:[%s802_s1 + $0x38] sm:$0xff] (!%p189_p2)   ;;  %v668_v14 = vld [vmem:[%s804_s3 + $0x20] sm:$0xff] (!%p189_p2)  }
   0x9   : > { %627 = vmatpush3.bf16.msra.mxu1 (!%p189_p2), %v664_v6  ;;  %v667_v13 = vld [vmem:[%s804_s3 + $0x18] sm:$0xff] (!%p189_p2)   ;;  %v669_v15 = vld [vmem:[%s804_s3 + $0x28] sm:$0xff] (!%p189_p2)   ;;  %v670_v16 = vld [vmem:[%s804_s3 + $0x30] sm:$0xff] (!%p189_p2)  }
   0xa   : > { %628 = vmatprep.subr.bf16.mxu1 (!%p189_p2), %v665_v7  ;;  %v671_v17 = vld [vmem:[%s804_s3 + $0x38] sm:$0xff] (!%p189_p2)   ;;  %v564_v18 = vld [vmem:[%s803_s2] ss:$0 sm:$0xff] (!%p189_p2) }
   0xb   : > { %609 = vmatpush3.bf16.msra.mxu0 (!%p189_p2), %v655_v1  ;;  %v575_v33 = vld [vmem:[%s805_s4] ss:$0 sm:$0xff] (!%p189_p2) }
   0xc   : > { %610 = vmatprep.subr.bf16.mxu0 (!%p189_p2), %v656_v2 }
   0xd   : > { %s808_s22 = smov (!%p217_p3, %s560_s22), 7  ;;  %629 = vmatpush3.bf16.msra.mxu1 %v665_v7 }
   0xe   : > { %s561_s27 = sshll.u32 %s808_s22, 2  ;;  %630 = vmatprep.subr.bf16.mxu1 %v666_v8  ;;  %s563_s13 = sshll.u32 %s808_s22, 3 }
   0xf   : > { %s220_s30 = scalar_lea.vmem %s801_s0, %s561_s27  ;;  %611 = vmatpush3.bf16.msra.mxu0 %v656_v2  ;;  %s226_s16 = scalar_lea.vmem %s806_s5, %s563_s13 }
  0x10   : > { %v662_v4 = vld [vmem:[%s220_s30] sm:$0xff]   ;;  %612 = vmatprep.subr.bf16.mxu0 %v657_v3  ;;  %v663_v12 = vld [vmem:[%s220_s30 + $0x8] sm:$0xff]  }
  0x11   : > { %622 = vmatprep.mubr.bf16.mxu0 %v662_v4  ;;  %631 = vmatpush3.bf16.msra.mxu1 %v666_v8 }
  0x12   : > { %632 = vmatprep.subr.bf16.mxu1 %v667_v13 }
  0x13   : > { %613 = vmatpush3.bf16.msra.mxu0 %v657_v3 }
  0x14   : > { %614 = vmatprep.subr.bf16.mxu0 %v658_v5 }
  0x15   : > { %633 = vmatpush3.bf16.msra.mxu1 %v667_v13 }
  0x16   : > { %634 = vmatprep.subr.bf16.mxu1 %v668_v14 }
  0x17   : > { %615 = vmatpush3.bf16.msra.mxu0 %v658_v5 }
  0x18   : > { %616 = vmatprep.subr.bf16.mxu0 %v659_v9 }
  0x19   : > { %635 = vmatpush3.bf16.msra.mxu1 %v668_v14 }
  0x1a   : > { %636 = vmatprep.subr.bf16.mxu1 %v669_v15 }
  0x1b   : > { %617 = vmatpush3.bf16.msra.mxu0 %v659_v9 }
  0x1c   : > { %618 = vmatprep.subr.bf16.mxu0 %v660_v10 }
  0x1d   : > { %637 = vmatpush3.bf16.msra.mxu1 %v669_v15 }
  0x1e   : > { %638 = vmatprep.subr.bf16.mxu1 %v670_v16 }
  0x1f   : > { %619 = vmatpush3.bf16.msra.mxu0 %v660_v10 }
  0x20   : > { %620 = vmatprep.subr.bf16.mxu0 %v661_v11 }
  0x21   : > { %639 = vmatpush3.bf16.msra.mxu1 %v670_v16 }
  0x22   : > { %640 = vmatprep.subr.bf16.mxu1 %v671_v17 }
  0x23   : > { %621 = vmatpush3.bf16.msra.mxu0 %v661_v11 }
  0x25   : > { %641 = vmatpush3.bf16.msra.mxu1 %v671_v17 }
  0x26   : > { %623 = vmatmul.mubr.bf16.vlgmr.msra.gmra.mrb[0].mxu0 %v663_v12 }
  0xf9   : > { %v624_v19 = vpop.f32.mrb[0].mxu0 }
  0xfa   : > { %v359_v20 = vadd.f32 %v624_v19, %v564_v18  ;;  %v350_v21 = vpop.f32.mrb[1].mxu0 }
  0xfb   : > { %v351_v22 = vadd.f32 %v564_v18, %v350_v21  ;;  %v625_v23 = vpop.f32.mrb[2].mxu0 }
  0xfc   : > { %672 = vtanh.f32 %v359_v20  ;;  %v362_v24 = vadd.f32 %v625_v23, %v564_v18  ;;  %v353_v25 = vpop.f32.mrb[3].mxu0 }
  0xfd   : > { %674 = vtanh.f32 %v351_v22  ;;  %v354_v26 = vadd.f32 %v564_v18, %v353_v25 }
  0xfe   : > { %676 = vtanh.f32 %v362_v24 }
  0xff   : > { %678 = vtanh.f32 %v354_v26 }
 0x106   : > { %v673_v27 = vpop.eup %672 }
 0x107   : > { %v675_v28 = vpop.eup %674 }
 0x108   : > { %v677_v29 = vpop.eup %676 }
 0x109   : > { %v679_v30 = vpop.eup %678  ;;  %v370_v31 = vpack.c.bf16 %v677_v29, %v673_v27 }
 0x10a   : > { %v369_v32 = vpack.c.bf16 %v679_v30, %v675_v28 }
 0x10c   : > { %642 = vmatprep.mubr.bf16.mxu1 %v369_v32 }
 0x10d   : > { %643 = vmatmul.mubr.bf16.vlgmr.msra.gmra.mrb[0].mxu1 %v370_v31 }
 0x1e0   : > { %v644_v34 = vpop.f32.mrb[0].mxu1 }
 0x1e1   : > { %v476_v35 = vpop.f32.mrb[1].mxu1  ;;  %v485_v38 = vadd.f32 %v644_v34, %v575_v33 }
 0x1e2   : > { %v477_v36 = vadd.f32 %v575_v33, %v476_v35  ;;  %v645_v37 = vpop.f32.mrb[2].mxu1 }
 0x1e3   : > { %v479_v39 = vpop.f32.mrb[3].mxu1  ;;  %v488_v40 = vadd.f32 %v645_v37, %v575_v33 }
 0x1e4   : > { %680 = vtanh.f32 %v477_v36  ;;  %v480_v41 = vadd.f32 %v575_v33, %v479_v39 }
 0x1e6   : > { %682 = vtanh.f32 %v480_v41 }
 0x1e7   : > { %684 = vtanh.f32 %v485_v38 }
 0x1e8   : > { %686 = vtanh.f32 %v488_v40 }
 0x1ee   : > { %v681_v42 = vpop.eup %680 }
 0x1ef   : > { %495 = vst [vmem:[%s226_s16] sm:$0xff] %v681_v42 }
 0x1f0   : > { %v683_v43 = vpop.eup %682 }
 0x1f1   : > { %v685_v44 = vpop.eup %684  ;;  %496 = vst [vmem:[%s226_s16 + $0x8] sm:$0xff] %v683_v43 }
 0x1f2   : > { %v687_v45 = vpop.eup %686  ;;  %497 = vst [vmem:[%s226_s16 + $0x10] sm:$0xff] %v685_v44 }
 0x1f3   : > { %498 = vst [vmem:[%s226_s16 + $0x18] sm:$0xff] %v687_v45 }
 0x1f4 PF: > { %s15_s18 = sadd.s32 1, %s694_s18  }
 0x1f5   : > { %p12_p4 = scmp.ge.s32.totalorder %s15_s18, 4  }
 0x1f7   :  { %14 = sbr.rel (!%p12_p4) target bundleno = 1 (0x1), region = 70 }

</bundles_post_ra>
